<compile_context>
chip_gen: v5e
topology: v5e:2x2
jax: 0.10.0
libtpu: 0.0.40
codegen_flags: <defaults>
</compile_context>

<pallas_src>
import math

import jax
import jax.numpy as jnp
from jax import lax
from jax.experimental import pallas as pl
from jax.experimental.pallas import tpu as pltpu


def _vmem_limit_bytes():
    # Re-derive the VMEM budget per generation (v7x has 64 MiB/TC vs 128 MiB
    # on v5e/v6e); leave ~40% headroom for compiler-internal scratch and the
    # double-buffered pipeline copies.
    try:
        cap = pltpu.get_tpu_info().vmem_capacity_bytes
    except Exception:
        cap = 128 * 1024 * 1024
    return max(32 * 1024 * 1024, min(int(cap * 0.6), 96 * 1024 * 1024))


# ---------------------------------------------------------------------------
# Kernel 1: fused per-head QKV projection.
# grid = (B, H, S // tm).  The (D, 3*hd) fused [q|k|v] weight block is
# invariant over the innermost row-tile axis, so it is DMA'd once per
# (batch, head) instead of once per row tile; each step is one wide matmul
# (N = 3*hd) plus one bias add.  The softmax scale is pre-folded into the q
# columns and x arrives already cast to bf16.
# ---------------------------------------------------------------------------
def _qkv_proj_kernel(x_ref, w_ref, b_ref, q_ref, k_ref, v_ref):
    hd = q_ref.shape[-1]
    x = x_ref[0]                                                     # (tm, D) bf16
    y = jnp.dot(x, w_ref[0], preferred_element_type=jnp.float32) + b_ref[0]
    q_ref[0, 0] = y[:, :hd].astype(q_ref.dtype)                      # (tm, hd)
    k_ref[0, 0] = y[:, hd:2 * hd].astype(k_ref.dtype)
    v_ref[0, 0] = y[:, 2 * hd:].astype(v_ref.dtype)


# ---------------------------------------------------------------------------
# Kernel 2: flash-style causal attention + fused output projection.
# grid = (B, S // tq, H).  The kv sweep is an in-kernel loop with a causal
# trip count; K/V stay in HBM (memory_space=pl.ANY) and only the causally
# needed prefix is streamed through a manual double buffer.  The causal mask
# is built only for diagonal-straddling tiles.  Each head's normalized
# context is projected (ctx @ Wp_h) and accumulated into a resident (tq, D)
# f32 tile that is written to HBM once per (batch, q-tile).
# ---------------------------------------------------------------------------
def _flash_attn_kernel(q_ref, k_hbm, v_hbm, wp_ref, bp_ref, o_ref,
                       kbuf, vbuf, sem, m_ref, l_ref, acc_ref, oacc_ref):
    b = pl.program_id(0)
    qi = pl.program_id(1)
    h = pl.program_id(2)
    num_heads = pl.num_programs(2)

    tq = q_ref.shape[2]
    tkv = kbuf.shape[1]
    q_start = qi * tq

    # Causal trip counts: kv tiles [0, n_full) are fully visible (no mask),
    # tiles [n_full, n_kv) straddle the diagonal (mask needed), tiles >= n_kv
    # are never touched (no DMA, no compute).
    n_kv = (q_start + tq - 1) // tkv + 1
    n_full = (q_start + 1) // tkv

    def fetch(ki, slot):
        off = ki * tkv
        pltpu.make_async_copy(k_hbm.at[b, h, pl.ds(off, tkv), :],
                              kbuf.at[slot], sem.at[0, slot]).start()
        pltpu.make_async_copy(v_hbm.at[b, h, pl.ds(off, tkv), :],
                              vbuf.at[slot], sem.at[1, slot]).start()

    fetch(0, 0)                                    # prime the double buffer

    # Reset online-softmax running state for this (batch, q-tile, head).
    m_ref[...] = jnp.full(m_ref.shape, -jnp.inf, dtype=m_ref.dtype)
    l_ref[...] = jnp.zeros_like(l_ref)
    acc_ref[...] = jnp.zeros_like(acc_ref)

    # Seed the fused output-projection accumulator with the bias once per
    # (batch, q-tile) — broadcast hoisted out of the head loop.
    @pl.when(h == 0)
    def _init_out():
        oacc_ref[...] = jnp.broadcast_to(bp_ref[...], oacc_ref.shape)

    q = q_ref[0, 0]                                # (tq, hd) bf16, scale pre-folded

    def kv_step(ki, masked):
        slot = ki & 1
        # Wait for this tile (wait descriptor only needs matching shape + sem).
        pltpu.make_async_copy(k_hbm.at[b, h, pl.ds(0, tkv), :],
                              kbuf.at[slot], sem.at[0, slot]).wait()
        pltpu.make_async_copy(v_hbm.at[b, h, pl.ds(0, tkv), :],
                              vbuf.at[slot], sem.at[1, slot]).wait()

        @pl.when(ki + 1 < n_kv)
        def _prefetch():
            fetch(ki + 1, 1 - slot)

        k = kbuf[slot]                             # (tkv, hd) bf16
        v = vbuf[slot]
        # q @ k^T via dot_general contracting last dims — no transposed copy.
        s = lax.dot_general(q, k, (((1,), (1,)), ((), ())),
                            preferred_element_type=jnp.float32)     # (tq, tkv)
        if masked:   # only diagonal-straddling tiles pay for the mask VPU work
            row = q_start + lax.broadcasted_iota(jnp.int32, (tq, tkv), 0)
            col = ki * tkv + lax.broadcasted_iota(jnp.int32, (tq, tkv), 1)
            s = s + jnp.where(col <= row, 0.0, -1e30)

        m_prev = m_ref[...]                                          # (tq, 1)
        m_new = jnp.maximum(m_prev, jnp.max(s, axis=-1, keepdims=True))
        alpha = jnp.exp(m_prev - m_new)
        p = jnp.exp(s - m_new)                                       # f32 softmax math
        l_ref[...] = alpha * l_ref[...] + jnp.sum(p, axis=-1, keepdims=True)
        acc_ref[...] = alpha * acc_ref[...] + jnp.dot(
            p.astype(jnp.bfloat16), v, preferred_element_type=jnp.float32)
        m_ref[...] = m_new

    def _sweep(lo, hi, masked):
        def body(ki, carry):
            kv_step(ki, masked)
            return carry
        lax.fori_loop(lo, hi, body, 0)

    _sweep(0, n_full, False)       # fully-visible kv tiles: no mask work
    _sweep(n_full, n_kv, True)     # diagonal tiles: masked

    # Normalize once, project this head's context and accumulate into the
    # resident (tq, D) output tile.
    inv_l = pl.reciprocal(l_ref[...], approx=True)                   # EUP, ~free
    ctx = (acc_ref[...] * inv_l).astype(jnp.bfloat16)                # (tq, hd)
    wp_h = wp_ref[h] if wp_ref.shape[0] > 1 else wp_ref[0]           # (hd, D)
    oacc_ref[...] += jnp.dot(ctx, wp_h, preferred_element_type=jnp.float32)

    # Write the lane-dense output block once per (batch, q-tile).
    @pl.when(h == num_heads - 1)
    def _write_out():
        o_ref[0] = oacc_ref[...].astype(o_ref.dtype)


# ---------------------------------------------------------------------------
# Wrapper
# ---------------------------------------------------------------------------
def causal_self_attention(x, w_qkv, b_qkv, w_proj, b_proj, num_heads,
                          *, block_m=512, block_q=128, block_kv=256):
    """Forward of CausalSelfAttention2 (eval mode).

    x:      [B, S, D] float32
    w_qkv:  [3D, D]   (PyTorch nn.Linear weight, y = x @ W^T + b)
    b_qkv:  [3D]
    w_proj: [D, D]
    b_proj: [D]
    """
    B, S, D = x.shape
    H = num_heads
    hd = D // H
    scale = 1.0 / math.sqrt(hd)

    tm = min(block_m, S)
    tq = min(block_q, S)
    tkv = min(block_kv, S)
    assert S % tm == 0 and S % tq == 0 and S % tkv == 0, "S must divide tile sizes"

    vmem_limit = _vmem_limit_bytes()

    # ---- one-time re-layout in the wrapper (no in-kernel transposes) ----
    x_bf = x.astype(jnp.bfloat16)                 # halve x DMA bytes, cast once
    # c_attn output columns are per-head [q_h | k_h | v_h] chunks of size hd.
    # Fused per-head weight block (H, D, 3*hd); 1/sqrt(hd) folded into q cols.
    col_scale = jnp.concatenate([jnp.full((hd,), scale, jnp.float32),
                                 jnp.ones((2 * hd,), jnp.float32)])
    w_fused = jnp.transpose(w_qkv.T.reshape(D, H, 3 * hd), (1, 0, 2))
    w_fused = (w_fused * col_scale).astype(jnp.bfloat16)             # (H, D, 3hd)
    b_fused = (b_qkv.reshape(H, 1, 3 * hd) * col_scale).astype(jnp.float32)
    # c_proj consumed as ctx @ W_proj^T; ctx lanes are head-major (h, hd).
    wp = jnp.transpose(w_proj).reshape(H, hd, D).astype(jnp.bfloat16)  # (H, hd, D)
    bp = b_proj.reshape(1, D).astype(jnp.float32)

    # ---- kernel 1: fused QKV projection into (B, H, S, hd) bf16 ----
    qkv_shape = jax.ShapeDtypeStruct((B, H, S, hd), jnp.bfloat16)
    proj_cost = pl.CostEstimate(
        flops=2 * B * S * D * 3 * D,
        transcendentals=0,
        bytes_accessed=B * H * S * D * 2 + 3 * D * D * 2 + 3 * B * S * D * 2)
    q, k, v = pl.pallas_call(
        _qkv_proj_kernel,
        out_shape=(qkv_shape, qkv_shape, qkv_shape),
        grid_spec=pltpu.PrefetchScalarGridSpec(
            num_scalar_prefetch=0,
            grid=(B, H, S // tm),
            in_specs=[
                pl.BlockSpec((1, tm, D), lambda b, h, i: (b, i, 0)),       # x rows
                pl.BlockSpec((1, D, 3 * hd), lambda b, h, i: (h, 0, 0)),   # fused W (resident over i)
                pl.BlockSpec((1, 1, 3 * hd), lambda b, h, i: (h, 0, 0)),   # fused bias
            ],
            out_specs=(
                pl.BlockSpec((1, 1, tm, hd), lambda b, h, i: (b, h, i, 0)),
                pl.BlockSpec((1, 1, tm, hd), lambda b, h, i: (b, h, i, 0)),
                pl.BlockSpec((1, 1, tm, hd), lambda b, h, i: (b, h, i, 0)),
            ),
        ),
        compiler_params=pltpu.CompilerParams(
            dimension_semantics=("parallel", "parallel", "parallel"),
            vmem_limit_bytes=vmem_limit),
        cost_estimate=proj_cost,
    )(x_bf, w_fused, b_fused)

    # ---- kernel 2: flash attention + fused output projection ----
    nq = S // tq
    # Keep W_proj fully resident (constant index_map) when its double-buffered
    # bf16 copy fits a conservative slice of the VMEM budget; else stream it
    # per head.
    wp_resident = 2 * H * hd * D * 2 <= vmem_limit // 4
    if wp_resident:
        wp_spec = pl.BlockSpec((H, hd, D), lambda b, qi, h: (0, 0, 0))
    else:
        wp_spec = pl.BlockSpec((1, hd, D), lambda b, qi, h: (h, 0, 0))

    attn_cost = pl.CostEstimate(
        flops=2 * B * S * S * D + 2 * B * S * D * D,   # QK^T + PV (causal-halved) + c_proj
        transcendentals=B * H * S * S // 2,
        bytes_accessed=(B * S * D * 2                  # Q
                        + B * nq * S * D * 2           # K+V causal prefixes
                        + D * D * 2 + D * 4            # W_proj + bias
                        + B * S * D * 4))              # output
    out = pl.pallas_call(
        _flash_attn_kernel,
        out_shape=jax.ShapeDtypeStruct((B, S, D), x.dtype),
        grid_spec=pltpu.PrefetchScalarGridSpec(
            num_scalar_prefetch=0,
            grid=(B, nq, H),
            in_specs=[
                pl.BlockSpec((1, 1, tq, hd), lambda b, qi, h: (b, h, qi, 0)),  # q tile
                pl.BlockSpec(memory_space=pl.ANY),      # K in HBM, manual causal DMA
                pl.BlockSpec(memory_space=pl.ANY),      # V in HBM, manual causal DMA
                wp_spec,                                # W_proj
                pl.BlockSpec((1, D), lambda b, qi, h: (0, 0)),                 # b_proj
            ],
            out_specs=pl.BlockSpec((1, tq, D), lambda b, qi, h: (b, qi, 0)),
            scratch_shapes=[
                pltpu.VMEM((2, tkv, hd), jnp.bfloat16),    # K double buffer
                pltpu.VMEM((2, tkv, hd), jnp.bfloat16),    # V double buffer
                pltpu.SemaphoreType.DMA((2, 2)),           # [K/V, slot]
                pltpu.VMEM((tq, 1), jnp.float32),          # running max m
                pltpu.VMEM((tq, 1), jnp.float32),          # running sum l
                pltpu.VMEM((tq, hd), jnp.float32),         # per-head ctx accumulator
                pltpu.VMEM((tq, D), jnp.float32),          # fused out-proj accumulator
            ],
        ),
        compiler_params=pltpu.CompilerParams(
            dimension_semantics=("parallel", "parallel", "arbitrary"),
            vmem_limit_bytes=vmem_limit),
        cost_estimate=attn_cost,
    )(q, k, v, wp, bp)
    return out


# ---------------------------------------------------------------------------
# Pure-JAX reference mirroring the PyTorch forward (eval mode).
# ---------------------------------------------------------------------------
def reference(x, w_qkv, b_qkv, w_proj, b_proj, num_heads):
    B, S, D = x.shape
    hd = D // num_heads
    scale = 1.0 / math.sqrt(hd)
    qkv = x @ w_qkv.T + b_qkv
    qkv = qkv.reshape(B, S, num_heads, 3 * hd)
    q, k, v = qkv[..., :hd], qkv[..., hd:2 * hd], qkv[..., 2 * hd:]
    q, k, v = (jnp.transpose(t, (0, 2, 1, 3)) for t in (q, k, v))
    s = jnp.einsum('bhqd,bhkd->bhqk', q, k) * scale
    mask = jnp.tril(jnp.ones((S, S), dtype=bool))
    s = jnp.where(mask[None, None], s, -jnp.inf)
    p = jax.nn.softmax(s, axis=-1)
    ctx = jnp.einsum('bhqk,bhkd->bhqd', p, v)
    ctx = jnp.transpose(ctx, (0, 2, 1, 3)).reshape(B, S, D)
    return ctx @ w_proj.T + b_proj


def _make_inputs(key, B, S, D):
    kx, k1, k2, k3, k4 = jax.random.split(key, 5)
    x = jax.random.normal(kx, (B, S, D), dtype=jnp.float32)
    w_qkv = jax.random.normal(k1, (3 * D, D), dtype=jnp.float32) * 0.05
    b_qkv = jax.random.normal(k2, (3 * D,), dtype=jnp.float32) * 0.05
    w_proj = jax.random.normal(k3, (D, D), dtype=jnp.float32) * 0.05
    b_proj = jax.random.normal(k4, (D,), dtype=jnp.float32) * 0.05
    return x, w_qkv, b_qkv, w_proj, b_proj


if __name__ == "__main__":
    key = jax.random.PRNGKey(0)
    k_small, k_big = jax.random.split(key)

    # --- small shape (matches the module's toy config) ---
    B, S, D, H = 2, 8, 32, 4
    x, w_qkv, b_qkv, w_proj, b_proj = _make_inputs(k_small, B, S, D)
    out = causal_self_attention(x, w_qkv, b_qkv, w_proj, b_proj, H)
    out = jax.block_until_ready(out)
    ref = reference(x, w_qkv, b_qkv, w_proj, b_proj, H)
    assert out.shape == (B, S, D)
    # bf16 MXU operands + approx reciprocal => looser tolerance than pure f32.
    assert jnp.allclose(out, ref, atol=2e-2, rtol=2e-2), "small-shape mismatch"

    # --- multi-tile shape: exercises the causal trip counts (both unmasked and
    # masked in-kernel kv loops), the manual K/V double-buffer hand-off, head
    # accumulation and kernel-1 weight residency across row tiles ---
    B2, S2, D2, H2 = 1, 512, 128, 2
    x2, w_qkv2, b_qkv2, w_proj2, b_proj2 = _make_inputs(k_big, B2, S2, D2)
    out2 = causal_self_attention(x2, w_qkv2, b_qkv2, w_proj2, b_proj2, H2,
                                 block_m=256)
    out2 = jax.block_until_ready(out2)
    ref2 = reference(x2, w_qkv2, b_qkv2, w_proj2, b_proj2, H2)
    assert out2.shape == (B2, S2, D2)
    assert jnp.allclose(out2, ref2, atol=5e-2, rtol=5e-2), "multi-tile mismatch"

    print("KERNEL_OK")
</pallas_src>

<mosaic_0001>
module attributes {stable_mosaic.version = 11 : i64} {
  func.func @_qkv_proj_kernel(%arg0: i32, %arg1: i32, %arg2: i32, %arg3: memref<1x8x32xbf16, #tpu.memory_space<vmem>>, %arg4: memref<1x32x24xbf16, #tpu.memory_space<vmem>>, %arg5: memref<1x1x24xf32, #tpu.memory_space<vmem>>, %arg6: memref<1x1x8x8xbf16, #tpu.memory_space<vmem>>, %arg7: memref<1x1x8x8xbf16, #tpu.memory_space<vmem>>, %arg8: memref<1x1x8x8xbf16, #tpu.memory_space<vmem>>) attributes {dimension_semantics = [#tpu.dimension_semantics<parallel>, #tpu.dimension_semantics<parallel>, #tpu.dimension_semantics<parallel>], iteration_bounds = array<i64: 2, 4, 1>, scalar_prefetch = 0 : i64, scratch_operands = 0 : i64, tpu.core_type = #tpu.core_type<tc>, window_params = [{transform_indices = @transform_0, window_bounds = array<i64: 1, 8, 32>}, {transform_indices = @transform_1, window_bounds = array<i64: 1, 32, 24>}, {transform_indices = @transform_2, window_bounds = array<i64: 1, 1, 24>}, {transform_indices = @transform_3, window_bounds = array<i64: 1, 1, 8, 8>}, {transform_indices = @transform_4, window_bounds = array<i64: 1, 1, 8, 8>}, {transform_indices = @transform_5, window_bounds = array<i64: 1, 1, 8, 8>}]} {
    %c0 = arith.constant 0 : index
    %c0_0 = arith.constant 0 : index
    %c0_1 = arith.constant 0 : index
    %0 = vector.load %arg3[%c0, %c0_0, %c0_1] : memref<1x8x32xbf16, #tpu.memory_space<vmem>>, vector<1x8x32xbf16>
    %1 = vector.shape_cast %0 : vector<1x8x32xbf16> to vector<8x32xbf16>
    %c0_2 = arith.constant 0 : index
    %c0_3 = arith.constant 0 : index
    %c0_4 = arith.constant 0 : index
    %2 = vector.load %arg4[%c0_2, %c0_3, %c0_4] : memref<1x32x24xbf16, #tpu.memory_space<vmem>>, vector<1x32x24xbf16>
    %3 = vector.shape_cast %2 : vector<1x32x24xbf16> to vector<32x24xbf16>
    %cst = arith.constant dense<0.000000e+00> : vector<8x24xf32>
    %4 = tpu.matmul %1, %3, %cst {dimension_numbers = #tpu.dot_dimension_numbers<[1], [0], [0], [1], [0, 0, 1, 1], [], []>} : vector<8x32xbf16>, vector<32x24xbf16>, vector<8x24xf32> -> vector<8x24xf32>
    %c0_5 = arith.constant 0 : index
    %c0_6 = arith.constant 0 : index
    %c0_7 = arith.constant 0 : index
    %5 = vector.load %arg5[%c0_5, %c0_6, %c0_7] : memref<1x1x24xf32, #tpu.memory_space<vmem>>, vector<1x1x24xf32>
    %6 = vector.shape_cast %5 : vector<1x1x24xf32> to vector<1x24xf32>
    %7 = vector.broadcast %6 : vector<1x24xf32> to vector<8x24xf32>
    %8 = arith.addf %4, %7 : vector<8x24xf32>
    %9 = vector.extract_strided_slice %8 {offsets = [0, 0], sizes = [8, 8], strides = [1, 1]} : vector<8x24xf32> to vector<8x8xf32>
    %10 = arith.truncf %9 : vector<8x8xf32> to vector<8x8xbf16>
    %c0_8 = arith.constant 0 : index
    %c0_9 = arith.constant 0 : index
    %c0_10 = arith.constant 0 : index
    %c0_11 = arith.constant 0 : index
    %11 = vector.load %arg6[%c0_8, %c0_9, %c0_10, %c0_11] : memref<1x1x8x8xbf16, #tpu.memory_space<vmem>>, vector<1x1x8x8xbf16>
    %12 = vector.shape_cast %11 : vector<1x1x8x8xbf16> to vector<8x8xbf16>
    %13 = vector.shape_cast %10 : vector<8x8xbf16> to vector<1x1x8x8xbf16>
    tpu.vector_store %arg6[%c0_8, %c0_9, %c0_10, %c0_11], %13 {strides = array<i32>} : memref<1x1x8x8xbf16, #tpu.memory_space<vmem>>, vector<1x1x8x8xbf16>,
    %14 = vector.extract_strided_slice %8 {offsets = [0, 8], sizes = [8, 8], strides = [1, 1]} : vector<8x24xf32> to vector<8x8xf32>
    %15 = arith.truncf %14 : vector<8x8xf32> to vector<8x8xbf16>
    %c0_12 = arith.constant 0 : index
    %c0_13 = arith.constant 0 : index
    %c0_14 = arith.constant 0 : index
    %c0_15 = arith.constant 0 : index
    %16 = vector.load %arg7[%c0_12, %c0_13, %c0_14, %c0_15] : memref<1x1x8x8xbf16, #tpu.memory_space<vmem>>, vector<1x1x8x8xbf16>
    %17 = vector.shape_cast %16 : vector<1x1x8x8xbf16> to vector<8x8xbf16>
    %18 = vector.shape_cast %15 : vector<8x8xbf16> to vector<1x1x8x8xbf16>
    tpu.vector_store %arg7[%c0_12, %c0_13, %c0_14, %c0_15], %18 {strides = array<i32>} : memref<1x1x8x8xbf16, #tpu.memory_space<vmem>>, vector<1x1x8x8xbf16>,
    %19 = vector.extract_strided_slice %8 {offsets = [0, 16], sizes = [8, 8], strides = [1, 1]} : vector<8x24xf32> to vector<8x8xf32>
    %20 = arith.truncf %19 : vector<8x8xf32> to vector<8x8xbf16>
    %c0_16 = arith.constant 0 : index
    %c0_17 = arith.constant 0 : index
    %c0_18 = arith.constant 0 : index
    %c0_19 = arith.constant 0 : index
    %21 = vector.load %arg8[%c0_16, %c0_17, %c0_18, %c0_19] : memref<1x1x8x8xbf16, #tpu.memory_space<vmem>>, vector<1x1x8x8xbf16>
    %22 = vector.shape_cast %21 : vector<1x1x8x8xbf16> to vector<8x8xbf16>
    %23 = vector.shape_cast %20 : vector<8x8xbf16> to vector<1x1x8x8xbf16>
    tpu.vector_store %arg8[%c0_16, %c0_17, %c0_18, %c0_19], %23 {strides = array<i32>} : memref<1x1x8x8xbf16, #tpu.memory_space<vmem>>, vector<1x1x8x8xbf16>,
    return
  }
  func.func @transform_0(%arg0: i32, %arg1: i32, %arg2: i32) -> (i32, i32, i32) {
    %c0_i32 = arith.constant 0 : i32
    %c0_i32_0 = arith.constant 0 : i32
    return %arg0, %arg2, %c0_i32 : i32, i32, i32
  }
  func.func @transform_1(%arg0: i32, %arg1: i32, %arg2: i32) -> (i32, i32, i32) {
    %c0_i32 = arith.constant 0 : i32
    %c0_i32_0 = arith.constant 0 : i32
    %c0_i32_1 = arith.constant 0 : i32
    return %arg1, %c0_i32, %c0_i32_0 : i32, i32, i32
  }
  func.func @transform_2(%arg0: i32, %arg1: i32, %arg2: i32) -> (i32, i32, i32) {
    %c0_i32 = arith.constant 0 : i32
    %c0_i32_0 = arith.constant 0 : i32
    %c0_i32_1 = arith.constant 0 : i32
    return %arg1, %c0_i32, %c0_i32_0 : i32, i32, i32
  }
  func.func @transform_3(%arg0: i32, %arg1: i32, %arg2: i32) -> (i32, i32, i32, i32) {
    %c0_i32 = arith.constant 0 : i32
    %c0_i32_0 = arith.constant 0 : i32
    return %arg0, %arg1, %arg2, %c0_i32 : i32, i32, i32, i32
  }
  func.func @transform_4(%arg0: i32, %arg1: i32, %arg2: i32) -> (i32, i32, i32, i32) {
    %c0_i32 = arith.constant 0 : i32
    %c0_i32_0 = arith.constant 0 : i32
    return %arg0, %arg1, %arg2, %c0_i32 : i32, i32, i32, i32
  }
  func.func @transform_5(%arg0: i32, %arg1: i32, %arg2: i32) -> (i32, i32, i32, i32) {
    %c0_i32 = arith.constant 0 : i32
    %c0_i32_0 = arith.constant 0 : i32
    return %arg0, %arg1, %arg2, %c0_i32 : i32, i32, i32, i32
  }
}

</mosaic_0001>

<bundles_post_ra>
// kernel: tpu_custom_call.1
= control target key start
LH: loop header
LB: loop body
LE: loop exit
PB: predicated region body
PF: predicated region fallthrough
CT: control target
= control target key end

     0   :  { %11 = vsyncpa [#allocation3], 0  ;;  %s1085_s0 = inlined_call_operand.vmem [shape: bf16[2,8,32], index: 0, kind: input, shape index: {}]   ;;  %s1086_s1 = inlined_call_operand.vmem [shape: bf16[4,32,24], index: 1, kind: input, shape index: {}]   ;;  %s1087_s2 = inlined_call_operand.vmem [shape: f32[4,1,24], index: 2, kind: input, shape index: {}]   ;;  %s1088_s3 = inlined_call_operand.hbm [shape: bf16[2,4,8,8], index: 3, kind: output, shape index: {0}]   ;;  %s1089_s4 = inlined_call_operand.hbm [shape: bf16[2,4,8,8], index: 4, kind: output, shape index: {1}]   ;;  %s1090_s5 = inlined_call_operand.hbm [shape: bf16[2,4,8,8], index: 5, kind: output, shape index: {2}]  }
   0x1   :  { %13 = vsyncpa [#allocation3 + $0x1], 0 }
   0x2   :  { %14 = vsyncpa [#allocation5], 0 }
   0x3   :  { %16 = vsyncpa [#allocation5 + $0x1], 0  ;;  %s903_s18 = smov 0   ;;  %s905_s19 = smov 0  }
   0x4   :  { %s907_s20 = smov 0   ;;  %s909_s21 = smov 0  }
   0x5   :  { %s911_s22 = smov 0   ;;  %s913_s23 = smov 0  }
   0x6   :  { %s915_s24 = smov 0   ;;  %s917_s25 = smov 0  }
   0x7 LB: > { %1096 = sst [smem:[#allocation9_spill]] %s865_s24  ;;  %s1092_s26 = sadd.s32 4294967295, %s869_s25   ;;  %s869_s25 = sphi %s917_s25, %s22_s25   ;;  %s865_s24 = sphi %s915_s24, %s1105_s24   ;;  %s861_s23 = sphi %s913_s23, %s1110_s23   ;;  %s857_s22 = sphi %s911_s22, %s1103_s22   ;;  %s853_s21 = sphi %s909_s21, %s1109_s21   ;;  %s849_s20 = sphi %s907_s20, %s1108_s20   ;;  %s845_s19 = sphi %s905_s19, %s1107_s19   ;;  %s841_s18 = sphi %s903_s18, %s1106_s18  }
   0x8   : > { %s1091_s27 = sadd.s32 4294967294, %s869_s25   ;;  %s37_s28 = sadd.s32 1, %s861_s23 }
   0x9   : > { %p39_p0 = scmp.ge.s32.totalorder %s37_s28, 4  ;;  %s41_s29 = sadd.s32 1, %s865_s24 }
   0xa   : > { %p142_p1 = scmp.ne.s32.totalorder %s849_s20, %s845_s19  ;;  %p143_p2 = scmp.eq.s32.totalorder %s1092_s26, 7 }
   0xb   : > { %s1112_s28 = smov (%p39_p0, %s37_s28), 0  ;;  %s1114_s29 = smov (!%p39_p0, %s41_s29), %s865_s24 }
   0xc   : > { %1097 = sst [smem:[#allocation10_spill]] %s1112_s28  ;;  %s126_s30 = ssub.s32 %s861_s23, %s1112_s28 }
   0xd   : > { %p956_p3 = por %p143_p2, %p142_p1  ;;  %p43_p4 = scmp.ge.s32.totalorder %s1114_s29, 2 }
   0xe   : > { %p148_p5 = scmp.ne.s32.totalorder %s845_s19, %s841_s18  ;;  %p149_p6 = scmp.eq.s32.totalorder %s1091_s27, 7 }
   0xf   : > { %p601_p7 = scmp.ge.s32.totalorder %s869_s25, 1  ;;  %s1116_s29 = smov (%p43_p4, %s1114_s29), 0 }
  0x10   : > { %1099 = sst [smem:[#allocation11_spill]] %s1116_s29  ;;  %p967_p8 = por %p149_p6, %p148_p5 }
  0x11   : > { %p251_p9 = scmp.lt.s32.totalorder %s869_s25, 9  ;;  %s125_s8 = ssub.s32 %s865_s24, %s1116_s29 }
  0x12   : > { %s132_s9 = sadd.s32 1, %s849_s20  ;;  %s127_s10 = sor.u32 %s126_s30, %s125_s8 }
  0x13   : > { %p252_p10 = pnand %p601_p7, %p251_p9  ;;  %p130_p11 = scmp.eq.s32.totalorder %s127_s10, 0 }
  0x14   : > { %p306_p12 = scmp.lt.s32.totalorder (!%p252_p10), %s853_s21, 3  ;;  %p299_p13 = scmp.lt.s32.totalorder (!%p252_p10), %s857_s22, 1 }
  0x15   : > { %s976_s11 = scalar_select %p130_p11, %s849_s20, %s132_s9  }
  0x16   : > { %255 = sbr.rel (%p252_p10) target bundleno = 300 (0x12c), region = 32  ;;  %s620_s28 = sshll.u32 (!%p252_p10), %s857_s22, 2 }
  0x17   : > { %s282_s24 = sand.u32 (!%p252_p10), 1, %s845_s19  }
  0x18   : > { %s994_s15 = sshll.u32 (!%p252_p10), %s282_s24, 2 }
  0x1b   : > { %s307_s12 = scalar_select %p306_p12, %s853_s21, 3  ;;  %vm336_vm0 = vcmask 261120   ;;  %vm354_vm1 = vcmask 60416  }
  0x1c   : > { %s300_s13 = scalar_select %p299_p13, %s857_s22, 1 }
  0x1d   : > { %s628_s14 = sshll.u32 %s307_s12, 4  ;;  %s313_s17 = scalar_lea.vmem %s1087_s2, %s307_s12 }
  0x1e   : > { %s310_s9 = scalar_lea.vmem %s1086_s1, %s628_s14  ;;  %s605_s10 = sshll.u32 %s300_s13, 2  ;;  %v714_v3 = vld [vmem:[%s313_s17] ss:$0 sm:$0xff] }
  0x1f   : > { %v630_v0 = vld [vmem:[%s310_s9 + $0x8] sm:$0xff]  ;;  %v629_v1 = vld [vmem:[%s310_s9] sm:$0xff]  ;;  %s305_s29 = scalar_lea.vmem %s1085_s0, %s605_s10  ;;  %s387_s12 = sadd.s32 %s853_s21, %s620_s28 }
  0x20   : > { %346 = vmatpush.bf16.msra.mxu0 %v630_v0  ;;  %v315_v2 = vld [vmem:[%s305_s29] sm:$0xf]  ;;  %s996_s14 = sshll.u32 %s387_s12, 2  ;;  %s284_s13 = scalar_lea.vmem [#allocation2], %s994_s15 }
  0x21   : > { %s389_s29 = scalar_lea.hbm %s1088_s3, %s996_s14  ;;  %s391_s22 = sshll.u32 %s284_s13, 4  ;;  %s392_s22 = int_to_ptr.vmem [resolvable:$true] %s391_s22 }
  0x22   : > { %s393_s16 = sshll.u32 %s389_s29, 4  ;;  %s871_s21 = smov 120   ;;  %s394_s16 = int_to_ptr.hbm [resolvable:$true] %s393_s16 }
  0x23   : > { %s366_s28 = scalar_lea.sflag [#allocation3], %s282_s24  ;;  %s729_s17 = sshra.s32 %s394_s16, 4  ;;  %s730_s17 = int_to_ptr.hbm [resolvable:$true] %s729_s17 }
  0x24   : > { %347 = vmatpush.bf16.msra.mxu0 %v629_v1  ;;  %s731_s30 = scalar_lea.hbm %s730_s17, 4  ;;  %s735_s10 = scalar_lea.hbm %s1088_s3, 32 }
  0x25   : > { %p732_p0 = scmp.ne.s32.totalorder %s730_s17, %s731_s30  ;;  %p736_p4 = scmp.lt.s32.totalorder %s730_s17, %s1088_s3 }
  0x26   : > { %p737_p5 = scmp.lt.s32.totalorder %s735_s10, %s731_s30 }
  0x27   : > { %616 = vmatmul.msk.bf16.vlgmr.msra.gmra.mxu0 %vm336_vm0, %v315_v2  ;;  %p733_p1 = pnand %p732_p0, %p956_p3 }
  0x28   : > { %p738_p6 = por %p737_p5, %p736_p4 }
  0x29   : > { %p734_p2 = pneg %p733_p1 }
  0x2b   : > { %p739_p7 = pnand %p738_p6, %p734_p2 }
  0xa4   : > { %v349_v4 = vpop.f32.mrf.mxu0 }
  0xa5   : > { %v350_v5 = vadd.f32 %v714_v3, %v349_v4 }
  0xa7   : > { %v353_v6 = vpack.c.bf16 %v350_v5, %v350_v5 }
  0xa9   : > { %357 = vrot.lane.b32.xlu0 %v353_v6, %s871_s21  ;;  %355 = vst.msk [vmem:[%s284_s13] sm:$0xf] %vm354_vm1, %v353_v6 }
  0xaa   : > { %742 = shalt.err (!%p739_p7)
}
  0xab   : > { %631 = dma.vmem_to_hbm [thread:$0]  (%p956_p3), %s392_s22, 64, %s394_s16, %s366_s28  }
  0xac   : > { %v351_v7 = vpop.f32.mrf.mxu0  ;;  %s872_s24 = smov 112   ;;  %s406_s13 = scalar_lea.hbm %s1089_s4, %s996_s14 }
  0xad   : > { %s1101_s21 = sadd.s32 4294967295, %s869_s25   ;;  %s291_s30 = scalar_lea.vmem [#allocation4], %s994_s15 }
  0xae   : > { %s1020_s17 = sand.u32 1, %s1101_s21   ;;  %s408_s8 = sshll.u32 %s291_s30, 4  ;;  %s409_s8 = int_to_ptr.vmem [resolvable:$true] %s408_s8 }
  0xaf   : > { %s410_s9 = sshll.u32 %s406_s13, 4  ;;  %s423_s28 = scalar_lea.hbm %s1090_s5, %s996_s14  ;;  %s411_s9 = int_to_ptr.hbm [resolvable:$true] %s410_s9 }
  0xb0   : > { %s371_s10 = scalar_lea.sflag [#allocation5], %s1020_s17  ;;  %s757_s12 = sshra.s32 %s411_s9, 4  ;;  %s758_s12 = int_to_ptr.hbm [resolvable:$true] %s757_s12 }
  0xb1   : > { %361 = vrot.lane.b32.xlu0 %v353_v6, %s872_s24  ;;  %s759_s26 = scalar_lea.hbm %s758_s12, 4  ;;  %s763_s29 = scalar_lea.hbm %s1089_s4, 32 }
  0xb2   : > { %p760_p9 = scmp.ne.s32.totalorder %s758_s12, %s759_s26  ;;  %p764_p12 = scmp.lt.s32.totalorder %s758_s12, %s1089_s4 }
  0xb3   : > { %p765_p13 = scmp.lt.s32.totalorder %s763_s29, %s759_s26 }
  0xb4   : > { %p761_p10 = pnand %p760_p9, %p956_p3 }
  0xb5   : > { %p766_p0 = por %p765_p13, %p764_p12 }
  0xb6   : > { %p762_p11 = pneg %p761_p10 }
  0xb8   : > { %p767_p1 = pnand %p766_p0, %p762_p11 }
 0x11b   : > { %v358_v8 = vpop.permute.xlu0 %357 }
 0x11c   : > { %360 = vst.msk [vmem:[%s291_s30] sm:$0xf] %vm354_vm1, %v358_v8 }
 0x11d   : > { %770 = shalt.err (!%p767_p1)
}
 0x11e   : > { %632 = dma.vmem_to_hbm [thread:$0]  (%p956_p3), %s409_s8, 64, %s411_s9, %s371_s10  }
 0x11f   : > { %s298_s14 = scalar_lea.vmem [#allocation6], %s994_s15  ;;  %s427_s22 = sshll.u32 %s423_s28, 4  ;;  %s428_s22 = int_to_ptr.hbm [resolvable:$true] %s427_s22 }
 0x120   : > { %s425_s30 = sshll.u32 %s298_s14, 4  ;;  %s785_s16 = sshra.s32 %s428_s22, 4  ;;  %s426_s30 = int_to_ptr.vmem [resolvable:$true] %s425_s30  ;;  %s786_s16 = int_to_ptr.hbm [resolvable:$true] %s785_s16 }
 0x121   : > { %s787_s12 = scalar_lea.hbm %s786_s16, 4  ;;  %s791_s27 = scalar_lea.hbm %s1090_s5, 32 }
 0x122   : > { %p788_p2 = scmp.ne.s32.totalorder %s786_s16, %s787_s12  ;;  %p792_p6 = scmp.lt.s32.totalorder %s786_s16, %s1090_s5 }
 0x123   : > { %v362_v9 = vpop.permute.xlu0 %361  ;;  %p793_p7 = scmp.lt.s32.totalorder %s791_s27, %s787_s12 }
 0x124   : > { %364 = vst.msk [vmem:[%s298_s14] sm:$0xf] %vm354_vm1, %v362_v9  ;;  %p789_p4 = pnand %p788_p2, %p956_p3 }
 0x125   : > { %p794_p9 = por %p793_p7, %p792_p6 }
 0x126   : > { %p790_p5 = pneg %p789_p4 }
 0x128   : > { %p795_p10 = pnand %p794_p9, %p790_p5 }
 0x12a   : > { %798 = shalt.err (!%p795_p10)
}
 0x12b   : > { %633 = dma.vmem_to_hbm [thread:$0]  (%p956_p3), %s426_s30, 64, %s428_s22, %s371_s10  }
 0x12c PF: > { %p647_p11 = scmp.ge.s32.totalorder %s869_s25, 2  ;;  %s439_s9 = sand.u32 1, %s841_s18  }
 0x12d   : > { %s440_s28 = scalar_lea.sflag [#allocation3], %s439_s9 }
 0x12e   : > { %p638_p12 = pnand %p647_p11, %p967_p8 }
 0x130   : > { %p639_p13 = pneg %p638_p12 }
 0x132   : > { %832 = dma.done.wait (%p639_p13), %s440_s28, 64  }
 0x133   : > { %834 = vsyncadd (%p639_p13), %s440_s28, 4294967232  ;;  %s1102_s29 = sadd.s32 4294967294, %s869_s25  }
 0x134   : > { %s449_s13 = sand.u32 1, %s1102_s29  }
 0x135   : > { %s450_s21 = scalar_lea.sflag [#allocation5], %s449_s13 }
 0x136   : > { %836 = dma.done.wait (%p639_p13), %s450_s21, 128  }
 0x137   : > { %838 = vsyncadd (%p639_p13), %s450_s21, 4294967168  ;;  %s22_s25 = sadd.s32 1, %s869_s25   ;;  %s1103_s22 = sld [smem:[#allocation9_spill]] }
 0x138   : > { %p19_p3 = scmp.ge.s32.totalorder %s22_s25, 10   ;;  %s1104_s6 = sld [smem:[#allocation10_spill]] }
 0x139   : > { %s1105_s24 = sld [smem:[#allocation11_spill]]  ;;  %s1106_s18 = smov %s845_s19 }
 0x13a   : > { %s1107_s19 = smov %s849_s20  ;;  %s1108_s20 = smov %s976_s11 }
 0x13b   : > { %s1109_s21 = smov %s861_s23  ;;  %21 = sbr.rel (!%p19_p3) target bundleno = 7 (0x7), region = 105 }
 0x13e   : > { %s1110_s23 = smov %s1104_s6 }
 0x140   :  { %466 = vsyncpa [#allocation3], 1 }
 0x141   :  { %468 = vsyncpa [#allocation3 + $0x1], 1 }
 0x142   :  { %469 = vsyncpa [#allocation5], 1 }
 0x143   :  { %471 = vsyncpa [#allocation5 + $0x1], 1 }

</bundles_post_ra>
